<compile_context>
chip_gen: v5e
topology: v5e:2x2
jax: 0.10.0
libtpu: 0.0.40
codegen_flags: <defaults>
</compile_context>

<pallas_src>
import functools

import numpy as np
import jax
import jax.numpy as jnp
from jax.experimental import pallas as pl
from jax.experimental.pallas import tpu as pltpu

LANE = 128   # f32 lane width
SUB = 8      # f32 sublane count


def _round_up(x, m):
    return (x + m - 1) // m * m


# ----------------------------------------------------------------------------
# Wrapper-side construction of the band-circulant matrices (NOT in the kernel)
# ----------------------------------------------------------------------------
def _analysis_matrices(ho, go, L, p_in, p_out):
    """Matrices M s.t. (signal of length L, zero-padded to p_in) @ M gives the
    circular-pad + valid-conv + [1::2] result (length L//2, padded to p_out)."""
    fl = int(ho.shape[0])
    Lh = L // 2
    t = np.arange(Lh)[:, None]                           # output index
    k = np.arange(fl)[None, :]                           # tap index
    rows = ((2 * t + 1 + k - fl // 2) % L).reshape(-1)   # source sample index
    cols = np.broadcast_to(t, (Lh, fl)).reshape(-1)

    def build(w):
        vals = jnp.broadcast_to(w[None, :], (Lh, fl)).reshape(-1)
        return jnp.zeros((p_in, p_out), jnp.float32).at[rows, cols].add(vals)

    return build(ho), build(go)


def _synthesis_matrices(Ho, Go, tp, p_in, p_out):
    """Matrices M s.t. (band of length tp, padded to p_in) @ M gives the
    zero-upsample + circular-pad + valid-conv result (length 2*tp, padded p_out)."""
    fl = int(Ho.shape[0])
    P = 2 * tp
    t = np.arange(P)[:, None]
    k = np.arange(fl)[None, :]
    pos = (t + k - fl // 2) % P
    valid = (pos % 2) == 0                               # upsampled nonzero at even idx
    rows = np.where(valid, pos // 2, 0).reshape(-1)
    cols = np.broadcast_to(t, (P, fl)).reshape(-1)
    vmask = jnp.asarray(valid.reshape(-1))

    def build(w):
        vals = jnp.where(vmask, jnp.broadcast_to(w[None, :], (P, fl)).reshape(-1), 0.0)
        return jnp.zeros((p_in, p_out), jnp.float32).at[rows, cols].add(vals)

    return build(Ho), build(Go)


# ----------------------------------------------------------------------------
# Pallas kernel: pure matmuls + lane-aligned stores
# ----------------------------------------------------------------------------
def _make_wavelet_kernel(levels, pads, offsets):
    # pads[i]    = lane-padded length of the level-i signal (i = 0..levels)
    # offsets[j] = lane offset of energy chunk j; chunk j < levels is detail_j
    #              (padded width pads[j+1]); chunk `levels` holds the coarsest
    #              approximation (padded width pads[levels]).
    def kernel(x_ref, *refs):
        ad_refs = refs[:levels]                    # fused [D_i | A_i] per level
        s_refs = refs[levels:3 * levels]           # MA_0, MD_0, MA_1, MD_1, ...
        energy_ref = refs[3 * levels]
        recon_ref = refs[3 * levels + 1]

        # ---- analysis: one fat matmul per level; detail streams to output ----
        cur = x_ref[...]
        for i in range(levels):
            w = pads[i + 1]
            y = jnp.dot(cur, ad_refs[i][...], preferred_element_type=jnp.float32)
            energy_ref[:, pl.ds(offsets[i], w)] = y[:, :w]     # detail band
            cur = y[:, w:]                                     # next approximation
        # coarsest approximation is the last energy chunk
        energy_ref[:, pl.ds(offsets[levels], pads[levels])] = cur

        # ---- synthesis: read the detail bands back from the energy output ----
        appr = cur
        for i in range(levels):
            lvl = levels - 1 - i
            ma = s_refs[2 * i][...]
            md = s_refs[2 * i + 1][...]
            det = energy_ref[:, pl.ds(offsets[lvl], pads[lvl + 1])]
            appr = (jnp.dot(appr, ma, preferred_element_type=jnp.float32)
                    + jnp.dot(det, md, preferred_element_type=jnp.float32))
        recon_ref[...] = appr

    return kernel


# ----------------------------------------------------------------------------
# Wrapper
# ----------------------------------------------------------------------------
@functools.partial(jax.jit, static_argnames=("levels",))
def wavelet_forward(x, ho, levels):
    """x: (B, 1, L), ho: (fl,).  Returns (energy_coeffs, reconstructed), both (B, 1, L)."""
    B, C, L = x.shape
    assert C == 1
    fl = ho.shape[0]
    assert fl % 2 == 0, "odd filter_length branch not implemented"
    assert L % (2 ** levels) == 0

    x = x.astype(jnp.float32)
    ho = ho.astype(jnp.float32)

    # UpdateFilters(): Ho = flip(ho); go = flip(ho) * (-1)^(idx+1); Go = flip(go)
    Ho = ho[::-1]
    signs = jnp.where(jnp.arange(fl) % 2 == 0, -1.0, 1.0).astype(jnp.float32)
    go = Ho * signs
    Go = go[::-1]

    # ---- static shape bookkeeping (lane / sublane padding) ----
    lens = [L >> i for i in range(levels + 1)]               # real per-level lengths
    pads = [_round_up(n, LANE) for n in lens]                # lane-padded lengths
    Bp = _round_up(B, SUB)
    if Bp > LANE:
        Bp = _round_up(B, LANE)
    BT = min(Bp, LANE)                                       # batch tile (sublane-dense)

    chunk_w = [pads[j + 1] for j in range(levels)] + [pads[levels]]
    offsets = [0]
    for w in chunk_w[:-1]:
        offsets.append(offsets[-1] + w)
    e_total = offsets[-1] + chunk_w[-1]

    # ---- build circulant matrices in the wrapper (depend only on taps + shape) ----
    mats = []
    for i in range(levels):
        a, d = _analysis_matrices(ho, go, lens[i], pads[i], pads[i + 1])
        mats.append(jnp.concatenate([d, a], axis=1))         # fused [D | A]
    for i in range(levels):
        tp = lens[levels - i]
        ma, md = _synthesis_matrices(Ho, Go, tp, pads[levels - i], pads[levels - i - 1])
        mats += [ma, md]

    # ---- zero-padded, lane/sublane-dense input ----
    x_pad = jnp.zeros((Bp, pads[0]), jnp.float32).at[:B, :L].set(x[:, 0, :])

    # ---- cost estimate & compiler params ----
    flops = 0
    for i in range(levels):
        flops += 2 * Bp * pads[i] * (2 * pads[i + 1])                     # fused analysis
        flops += 2 * 2 * Bp * pads[levels - i] * pads[levels - i - 1]     # synthesis
    operand_bytes = 4 * (x_pad.size + sum(int(m.size) for m in mats)
                         + Bp * e_total + Bp * pads[0])
    cost = pl.CostEstimate(flops=int(flops), transcendentals=0,
                           bytes_accessed=int(operand_bytes))
    vmem_limit = int(min(max(2 * operand_bytes, 16 * 2 ** 20), 64 * 2 ** 20))
    cparams = pltpu.CompilerParams(
        dimension_semantics=("parallel",),
        vmem_limit_bytes=vmem_limit,
    )

    kernel = _make_wavelet_kernel(levels, pads, offsets)
    mat_specs = [pl.BlockSpec(tuple(int(s) for s in m.shape), lambda b: (0, 0))
                 for m in mats]

    energy_pad, recon_pad = pl.pallas_call(
        kernel,
        grid=(Bp // BT,),
        out_shape=(
            jax.ShapeDtypeStruct((Bp, e_total), jnp.float32),
            jax.ShapeDtypeStruct((Bp, pads[0]), jnp.float32),
        ),
        in_specs=[pl.BlockSpec((BT, pads[0]), lambda b: (b, 0))] + mat_specs,
        out_specs=(
            pl.BlockSpec((BT, e_total), lambda b: (b, 0)),
            pl.BlockSpec((BT, pads[0]), lambda b: (b, 0)),
        ),
        compiler_params=cparams,
        cost_estimate=cost,
    )(x_pad, *mats)

    # ---- crop the padding and restore the (B, 1, L) PyTorch layout ----
    e_chunks = [energy_pad[:B, offsets[j]:offsets[j] + lens[j + 1]] for j in range(levels)]
    e_chunks.append(energy_pad[:B, offsets[levels]:offsets[levels] + lens[levels]])
    energy = jnp.concatenate(e_chunks, axis=1)
    recon = recon_pad[:B, :L]
    return energy[:, None, :], recon[:, None, :]


# ----------------------------------------------------------------------------
# NumPy reference mimicking the PyTorch code line-for-line (float64)
# ----------------------------------------------------------------------------
def _conv1d_valid(x, w):
    fl = w.shape[0]
    P = x.shape[2]
    out = np.zeros((x.shape[0], 1, P - fl + 1), dtype=x.dtype)
    for k in range(fl):
        out += w[k] * x[:, :, k:k + P - fl + 1]
    return out


def ref_forward(x, ho, levels):
    fl = ho.shape[0]
    B, _, L = x.shape
    Ho = ho[::-1].copy()
    go = ho[::-1].copy()
    for idx in range(fl):
        go[idx] = ((-1) ** (idx + 1)) * go[idx]
    Go = go[::-1].copy()

    cur = x
    approxs = details = None
    for i in range(levels):
        p = np.concatenate([cur[:, :, -fl // 2:], cur, cur[:, :, :fl // 2 - 1]], axis=2)
        approx = _conv1d_valid(p, ho)[:, :, 1::2]
        detail = _conv1d_valid(p, go)[:, :, 1::2]
        cur = approx
        if i == 0:
            approxs, details = approx, detail
        else:
            approxs = np.concatenate([approxs, approx], axis=2)
            details = np.concatenate([details, detail], axis=2)

    size = int(L / 2 ** levels)
    appr_loop = approxs[:, :, -size:]
    two_powers = size
    first = True
    for i in range(levels):
        an = np.zeros((B, 1, 2 * two_powers), dtype=x.dtype)
        an[:, :, 0::2] = appr_loop
        dn = np.zeros((B, 1, 2 * two_powers), dtype=x.dtype)
        if first:
            dn[:, :, 0::2] = details[:, :, -size:]
            first = False
        else:
            dn[:, :, 0::2] = details[:, :, -size:-size + two_powers]
        dn = np.concatenate([dn[:, :, -fl // 2:], dn, dn[:, :, :fl // 2 - 1]], axis=2)
        an = np.concatenate([an[:, :, -fl // 2:], an, an[:, :, :fl // 2 - 1]], axis=2)
        an = _conv1d_valid(an, Ho)
        dn = _conv1d_valid(dn, Go)
        appr_loop = an + dn
        size += 2 * two_powers
        two_powers *= 2

    energy = np.concatenate([details, approxs[:, :, -int(L / 2 ** levels):]], axis=2)
    return energy, appr_loop


# ----------------------------------------------------------------------------
# Main
# ----------------------------------------------------------------------------
if __name__ == "__main__":
    filter_length = 4
    levels = 2
    batch_size = 2
    data_length = 16

    key = jax.random.PRNGKey(0)
    k_ho, k_x = jax.random.split(key)
    ho = jax.random.normal(k_ho, (filter_length,), dtype=jnp.float32)
    x = jax.random.normal(k_x, (batch_size, 1, data_length), dtype=jnp.float32)

    energy, recon = wavelet_forward(x, ho, levels)
    jax.block_until_ready((energy, recon))

    # correctness check against a NumPy transcription of the PyTorch forward
    ref_energy, ref_recon = ref_forward(
        np.asarray(x, dtype=np.float64), np.asarray(ho, dtype=np.float64), levels
    )
    np.testing.assert_allclose(np.asarray(energy), ref_energy, rtol=1e-4, atol=1e-4)
    np.testing.assert_allclose(np.asarray(recon), ref_recon, rtol=1e-4, atol=1e-4)

    print("KERNEL_OK")
</pallas_src>

<mosaic_0001>
module attributes {stable_mosaic.version = 11 : i64} {
  func.func @kernel(%arg0: i32, %arg1: memref<8x128xf32, #tpu.memory_space<vmem>>, %arg2: memref<128x256xf32, #tpu.memory_space<vmem>>, %arg3: memref<128x256xf32, #tpu.memory_space<vmem>>, %arg4: memref<128x128xf32, #tpu.memory_space<vmem>>, %arg5: memref<128x128xf32, #tpu.memory_space<vmem>>, %arg6: memref<128x128xf32, #tpu.memory_space<vmem>>, %arg7: memref<128x128xf32, #tpu.memory_space<vmem>>, %arg8: memref<8x384xf32, #tpu.memory_space<vmem>>, %arg9: memref<8x128xf32, #tpu.memory_space<vmem>>) attributes {dimension_semantics = [#tpu.dimension_semantics<parallel>], iteration_bounds = array<i64: 1>, scalar_prefetch = 0 : i64, scratch_operands = 0 : i64, tpu.core_type = #tpu.core_type<tc>, window_params = [{transform_indices = @transform_0, window_bounds = array<i64: 8, 128>}, {pipeline_mode = #tpu.pipeline_mode<synchronous>, transform_indices = @transform_1, window_bounds = array<i64: 128, 256>}, {pipeline_mode = #tpu.pipeline_mode<synchronous>, transform_indices = @transform_2, window_bounds = array<i64: 128, 256>}, {pipeline_mode = #tpu.pipeline_mode<synchronous>, transform_indices = @transform_3, window_bounds = array<i64: 128, 128>}, {pipeline_mode = #tpu.pipeline_mode<synchronous>, transform_indices = @transform_4, window_bounds = array<i64: 128, 128>}, {pipeline_mode = #tpu.pipeline_mode<synchronous>, transform_indices = @transform_5, window_bounds = array<i64: 128, 128>}, {pipeline_mode = #tpu.pipeline_mode<synchronous>, transform_indices = @transform_6, window_bounds = array<i64: 128, 128>}, {transform_indices = @transform_7, window_bounds = array<i64: 8, 384>}, {transform_indices = @transform_8, window_bounds = array<i64: 8, 128>}]} {
    %c0 = arith.constant 0 : index
    %c0_0 = arith.constant 0 : index
    %0 = vector.load %arg1[%c0, %c0_0] : memref<8x128xf32, #tpu.memory_space<vmem>>, vector<8x128xf32>
    %c0_1 = arith.constant 0 : index
    %c0_2 = arith.constant 0 : index
    %1 = vector.load %arg2[%c0_1, %c0_2] : memref<128x256xf32, #tpu.memory_space<vmem>>, vector<128x256xf32>
    %cst = arith.constant dense<0.000000e+00> : vector<8x256xf32>
    %2 = tpu.matmul %0, %1, %cst {dimension_numbers = #tpu.dot_dimension_numbers<[1], [0], [0], [1], [0, 0, 1, 1], [], []>} : vector<8x128xf32>, vector<128x256xf32>, vector<8x256xf32> -> vector<8x256xf32>
    %3 = vector.extract_strided_slice %2 {offsets = [0, 0], sizes = [8, 128], strides = [1, 1]} : vector<8x256xf32> to vector<8x128xf32>
    %c0_3 = arith.constant 0 : index
    %c0_4 = arith.constant 0 : index
    %4 = vector.load %arg8[%c0_3, %c0_4] : memref<8x384xf32, #tpu.memory_space<vmem>>, vector<8x128xf32>
    tpu.vector_store %arg8[%c0_3, %c0_4], %3 {strides = array<i32>} : memref<8x384xf32, #tpu.memory_space<vmem>>, vector<8x128xf32>,
    %5 = vector.extract_strided_slice %2 {offsets = [0, 128], sizes = [8, 128], strides = [1, 1]} : vector<8x256xf32> to vector<8x128xf32>
    %c0_5 = arith.constant 0 : index
    %c0_6 = arith.constant 0 : index
    %6 = vector.load %arg3[%c0_5, %c0_6] : memref<128x256xf32, #tpu.memory_space<vmem>>, vector<128x256xf32>
    %cst_7 = arith.constant dense<0.000000e+00> : vector<8x256xf32>
    %7 = tpu.matmul %5, %6, %cst_7 {dimension_numbers = #tpu.dot_dimension_numbers<[1], [0], [0], [1], [0, 0, 1, 1], [], []>} : vector<8x128xf32>, vector<128x256xf32>, vector<8x256xf32> -> vector<8x256xf32>
    %8 = vector.extract_strided_slice %7 {offsets = [0, 0], sizes = [8, 128], strides = [1, 1]} : vector<8x256xf32> to vector<8x128xf32>
    %c0_8 = arith.constant 0 : index
    %c128 = arith.constant 128 : index
    %9 = vector.load %arg8[%c0_8, %c128] : memref<8x384xf32, #tpu.memory_space<vmem>>, vector<8x128xf32>
    tpu.vector_store %arg8[%c0_8, %c128], %8 {strides = array<i32>} : memref<8x384xf32, #tpu.memory_space<vmem>>, vector<8x128xf32>,
    %10 = vector.extract_strided_slice %7 {offsets = [0, 128], sizes = [8, 128], strides = [1, 1]} : vector<8x256xf32> to vector<8x128xf32>
    %c0_9 = arith.constant 0 : index
    %c256 = arith.constant 256 : index
    %11 = vector.load %arg8[%c0_9, %c256] : memref<8x384xf32, #tpu.memory_space<vmem>>, vector<8x128xf32>
    tpu.vector_store %arg8[%c0_9, %c256], %10 {strides = array<i32>} : memref<8x384xf32, #tpu.memory_space<vmem>>, vector<8x128xf32>,
    %c0_10 = arith.constant 0 : index
    %c0_11 = arith.constant 0 : index
    %12 = vector.load %arg4[%c0_10, %c0_11] : memref<128x128xf32, #tpu.memory_space<vmem>>, vector<128x128xf32>
    %c0_12 = arith.constant 0 : index
    %c0_13 = arith.constant 0 : index
    %13 = vector.load %arg5[%c0_12, %c0_13] : memref<128x128xf32, #tpu.memory_space<vmem>>, vector<128x128xf32>
    %c0_14 = arith.constant 0 : index
    %c128_15 = arith.constant 128 : index
    %14 = vector.load %arg8[%c0_14, %c128_15] : memref<8x384xf32, #tpu.memory_space<vmem>>, vector<8x128xf32>
    %cst_16 = arith.constant dense<0.000000e+00> : vector<8x128xf32>
    %15 = tpu.matmul %10, %12, %cst_16 {dimension_numbers = #tpu.dot_dimension_numbers<[1], [0], [0], [1], [0, 0, 1, 1], [], []>} : vector<8x128xf32>, vector<128x128xf32>, vector<8x128xf32> -> vector<8x128xf32>
    %cst_17 = arith.constant dense<0.000000e+00> : vector<8x128xf32>
    %16 = tpu.matmul %14, %13, %cst_17 {dimension_numbers = #tpu.dot_dimension_numbers<[1], [0], [0], [1], [0, 0, 1, 1], [], []>} : vector<8x128xf32>, vector<128x128xf32>, vector<8x128xf32> -> vector<8x128xf32>
    %17 = arith.addf %15, %16 : vector<8x128xf32>
    %c0_18 = arith.constant 0 : index
    %c0_19 = arith.constant 0 : index
    %18 = vector.load %arg6[%c0_18, %c0_19] : memref<128x128xf32, #tpu.memory_space<vmem>>, vector<128x128xf32>
    %c0_20 = arith.constant 0 : index
    %c0_21 = arith.constant 0 : index
    %19 = vector.load %arg7[%c0_20, %c0_21] : memref<128x128xf32, #tpu.memory_space<vmem>>, vector<128x128xf32>
    %c0_22 = arith.constant 0 : index
    %c0_23 = arith.constant 0 : index
    %20 = vector.load %arg8[%c0_22, %c0_23] : memref<8x384xf32, #tpu.memory_space<vmem>>, vector<8x128xf32>
    %cst_24 = arith.constant dense<0.000000e+00> : vector<8x128xf32>
    %21 = tpu.matmul %17, %18, %cst_24 {dimension_numbers = #tpu.dot_dimension_numbers<[1], [0], [0], [1], [0, 0, 1, 1], [], []>} : vector<8x128xf32>, vector<128x128xf32>, vector<8x128xf32> -> vector<8x128xf32>
    %cst_25 = arith.constant dense<0.000000e+00> : vector<8x128xf32>
    %22 = tpu.matmul %20, %19, %cst_25 {dimension_numbers = #tpu.dot_dimension_numbers<[1], [0], [0], [1], [0, 0, 1, 1], [], []>} : vector<8x128xf32>, vector<128x128xf32>, vector<8x128xf32> -> vector<8x128xf32>
    %23 = arith.addf %21, %22 : vector<8x128xf32>
    %c0_26 = arith.constant 0 : index
    %c0_27 = arith.constant 0 : index
    %24 = vector.load %arg9[%c0_26, %c0_27] : memref<8x128xf32, #tpu.memory_space<vmem>>, vector<8x128xf32>
    tpu.vector_store %arg9[%c0_26, %c0_27], %23 {strides = array<i32>} : memref<8x128xf32, #tpu.memory_space<vmem>>, vector<8x128xf32>,
    return
  }
  func.func @transform_0(%arg0: i32) -> (i32, i32) {
    %c0_i32 = arith.constant 0 : i32
    %c0_i32_0 = arith.constant 0 : i32
    return %arg0, %c0_i32 : i32, i32
  }
  func.func @transform_1(%arg0: i32) -> (i32, i32) {
    %c0_i32 = arith.constant 0 : i32
    %c0_i32_0 = arith.constant 0 : i32
    %c0_i32_1 = arith.constant 0 : i32
    return %c0_i32, %c0_i32_0 : i32, i32
  }
  func.func @transform_2(%arg0: i32) -> (i32, i32) {
    %c0_i32 = arith.constant 0 : i32
    %c0_i32_0 = arith.constant 0 : i32
    %c0_i32_1 = arith.constant 0 : i32
    return %c0_i32, %c0_i32_0 : i32, i32
  }
  func.func @transform_3(%arg0: i32) -> (i32, i32) {
    %c0_i32 = arith.constant 0 : i32
    %c0_i32_0 = arith.constant 0 : i32
    %c0_i32_1 = arith.constant 0 : i32
    return %c0_i32, %c0_i32_0 : i32, i32
  }
  func.func @transform_4(%arg0: i32) -> (i32, i32) {
    %c0_i32 = arith.constant 0 : i32
    %c0_i32_0 = arith.constant 0 : i32
    %c0_i32_1 = arith.constant 0 : i32
    return %c0_i32, %c0_i32_0 : i32, i32
  }
  func.func @transform_5(%arg0: i32) -> (i32, i32) {
    %c0_i32 = arith.constant 0 : i32
    %c0_i32_0 = arith.constant 0 : i32
    %c0_i32_1 = arith.constant 0 : i32
    return %c0_i32, %c0_i32_0 : i32, i32
  }
  func.func @transform_6(%arg0: i32) -> (i32, i32) {
    %c0_i32 = arith.constant 0 : i32
    %c0_i32_0 = arith.constant 0 : i32
    %c0_i32_1 = arith.constant 0 : i32
    return %c0_i32, %c0_i32_0 : i32, i32
  }
  func.func @transform_7(%arg0: i32) -> (i32, i32) {
    %c0_i32 = arith.constant 0 : i32
    %c0_i32_0 = arith.constant 0 : i32
    return %arg0, %c0_i32 : i32, i32
  }
  func.func @transform_8(%arg0: i32) -> (i32, i32) {
    %c0_i32 = arith.constant 0 : i32
    %c0_i32_0 = arith.constant 0 : i32
    return %arg0, %c0_i32 : i32, i32
  }
}

</mosaic_0001>

<bundles_post_ra>
// kernel: wavelet_forward.1
= control target key start
LH: loop header
LB: loop body
LE: loop exit
PB: predicated region body
PF: predicated region fallthrough
CT: control target
= control target key end

     0   :  { %s779_s1 = inlined_call_operand.vmem [shape: f32[128,256], index: 1, kind: input, shape index: {}]   ;;  %s780_s2 = inlined_call_operand.vmem [shape: f32[128,256], index: 2, kind: input, shape index: {}]   ;;  %s781_s0 = inlined_call_operand.vmem [shape: f32[8,128], index: 0, kind: input, shape index: {}]   ;;  %s782_s3 = inlined_call_operand.vmem [shape: f32[128,128], index: 3, kind: input, shape index: {}]   ;;  %s783_s4 = inlined_call_operand.vmem [shape: f32[128,128], index: 4, kind: input, shape index: {}]   ;;  %s784_s6 = inlined_call_operand.vmem [shape: f32[128,128], index: 6, kind: input, shape index: {}]   ;;  %s785_s5 = inlined_call_operand.vmem [shape: f32[128,128], index: 5, kind: input, shape index: {}]   ;;  %s786_s7 = inlined_call_operand.vmem [shape: f32[8,384], index: 7, kind: output, shape index: {0}]   ;;  %s787_s8 = inlined_call_operand.vmem [shape: f32[8,128], index: 8, kind: output, shape index: {1}]  }
   0x1   :  { %v60_v0 = vld [vmem:[%s779_s1 + $0xf8] sm:$0xff]  ;;  %v58_v1 = vld [vmem:[%s779_s1 + $0xe8] sm:$0xff]  ;;  %v132_v5 = vld [vmem:[%s780_s2 + $0xf0] sm:$0xff] }
   0x2   :  { %81 = vmatpush.msra.mxu1 %v60_v0  ;;  %v56_v2 = vld [vmem:[%s779_s1 + $0xd8] sm:$0xff]  ;;  %v54_v3 = vld [vmem:[%s779_s1 + $0xc8] sm:$0xff]  ;;  %134 = vmatpush.msra.mxu2 %v132_v5  ;;  %v130_v7 = vld [vmem:[%s780_s2 + $0xe0] sm:$0xff] }
   0x3   :  { %v52_v4 = vld [vmem:[%s779_s1 + $0xb8] sm:$0xff]  ;;  %v131_v8 = vld [vmem:[%s780_s2 + $0xe8] sm:$0xff]  ;;  %v128_v9 = vld [vmem:[%s780_s2 + $0xd0] sm:$0xff] }
   0x4   :  { %82 = vmatpush.msra.mxu1 %v58_v1  ;;  %v133_v6 = vld [vmem:[%s780_s2 + $0xf8] sm:$0xff]  ;;  %v50_v10 = vld [vmem:[%s779_s1 + $0xa8] sm:$0xff]  ;;  %135 = vmatpush.msra.mxu2 %v130_v7  ;;  %v126_v12 = vld [vmem:[%s780_s2 + $0xc0] sm:$0xff] }
   0x5   :  { %154 = vmatpush.msra.mxu3 %v133_v6  ;;  %v129_v11 = vld [vmem:[%s780_s2 + $0xd8] sm:$0xff]  ;;  %v127_v14 = vld [vmem:[%s780_s2 + $0xc8] sm:$0xff]  ;;  %v124_v15 = vld [vmem:[%s780_s2 + $0xb0] sm:$0xff] }
   0x6   :  { %83 = vmatpush.msra.mxu1 %v56_v2  ;;  %v48_v13 = vld [vmem:[%s779_s1 + $0x98] sm:$0xff]  ;;  %136 = vmatpush.msra.mxu2 %v128_v9  ;;  %v46_v16 = vld [vmem:[%s779_s1 + $0x88] sm:$0xff]  ;;  %v122_v18 = vld [vmem:[%s780_s2 + $0xa0] sm:$0xff] }
   0x7   :  { %155 = vmatpush.msra.mxu3 %v131_v8  ;;  %v125_v17 = vld [vmem:[%s780_s2 + $0xb8] sm:$0xff]  ;;  %v123_v20 = vld [vmem:[%s780_s2 + $0xa8] sm:$0xff]  ;;  %v120_v21 = vld [vmem:[%s780_s2 + $0x90] sm:$0xff] }
   0x8   :  { %84 = vmatpush.msra.mxu1 %v54_v3  ;;  %137 = vmatpush.msra.mxu2 %v126_v12  ;;  %v44_v19 = vld [vmem:[%s779_s1 + $0x78] sm:$0xff]  ;;  %v42_v22 = vld [vmem:[%s779_s1 + $0x68] sm:$0xff]  ;;  %v118_v24 = vld [vmem:[%s780_s2 + $0x80] sm:$0xff] }
   0x9   :  { %156 = vmatpush.msra.mxu3 %v129_v11  ;;  %v121_v23 = vld [vmem:[%s780_s2 + $0x98] sm:$0xff]  ;;  %v119_v26 = vld [vmem:[%s780_s2 + $0x88] sm:$0xff]  ;;  %v116_v27 = vld [vmem:[%s780_s2 + $0x70] sm:$0xff] }
   0xa   :  { %85 = vmatpush.msra.mxu1 %v52_v4  ;;  %138 = vmatpush.msra.mxu2 %v124_v15  ;;  %v40_v25 = vld [vmem:[%s779_s1 + $0x58] sm:$0xff]  ;;  %v38_v28 = vld [vmem:[%s779_s1 + $0x48] sm:$0xff]  ;;  %v114_v30 = vld [vmem:[%s780_s2 + $0x60] sm:$0xff] }
   0xb   :  { %157 = vmatpush.msra.mxu3 %v127_v14  ;;  %v117_v29 = vld [vmem:[%s780_s2 + $0x78] sm:$0xff]  ;;  %v115_v32 = vld [vmem:[%s780_s2 + $0x68] sm:$0xff]  ;;  %v112_v33 = vld [vmem:[%s780_s2 + $0x50] sm:$0xff] }
   0xc   :  { %86 = vmatpush.msra.mxu1 %v50_v10  ;;  %139 = vmatpush.msra.mxu2 %v122_v18  ;;  %v36_v31 = vld [vmem:[%s779_s1 + $0x38] sm:$0xff]  ;;  %v34_v34 = vld [vmem:[%s779_s1 + $0x28] sm:$0xff]  ;;  %v110_v36 = vld [vmem:[%s780_s2 + $0x40] sm:$0xff] }
   0xd   :  { %158 = vmatpush.msra.mxu3 %v125_v17  ;;  %v113_v35 = vld [vmem:[%s780_s2 + $0x58] sm:$0xff]  ;;  %v111_v38 = vld [vmem:[%s780_s2 + $0x48] sm:$0xff]  ;;  %v108_v39 = vld [vmem:[%s780_s2 + $0x30] sm:$0xff] }
   0xe   :  { %87 = vmatpush.msra.mxu1 %v48_v13  ;;  %140 = vmatpush.msra.mxu2 %v120_v21  ;;  %v32_v37 = vld [vmem:[%s779_s1 + $0x18] sm:$0xff]  ;;  %v30_v40 = vld [vmem:[%s779_s1 + $0x8] sm:$0xff]  ;;  %v505_v42 = vld [vmem:[%s781_s0] sm:$0xff] }
   0xf   :  { %159 = vmatpush.msra.mxu3 %v123_v20  ;;  %v109_v41 = vld [vmem:[%s780_s2 + $0x38] sm:$0xff]  ;;  %v106_v43 = vld [vmem:[%s780_s2 + $0x20] sm:$0xff]  ;;  %v107_v44 = vld [vmem:[%s780_s2 + $0x28] sm:$0xff] }
  0x10   :  { %88 = vmatpush.msra.mxu1 %v46_v16  ;;  %141 = vmatpush.msra.mxu2 %v118_v24  ;;  %v104_v45 = vld [vmem:[%s780_s2 + $0x10] sm:$0xff]  ;;  %v105_v46 = vld [vmem:[%s780_s2 + $0x18] sm:$0xff]  ;;  %v102_v47 = vld [vmem:[%s780_s2] sm:$0xff] }
  0x11   :  { %160 = vmatpush.msra.mxu3 %v121_v23  ;;  %v103_v48 = vld [vmem:[%s780_s2 + $0x8] sm:$0xff]  ;;  %v59_v49 = vld [vmem:[%s779_s1 + $0xf0] sm:$0xff]  ;;  %v57_v50 = vld [vmem:[%s779_s1 + $0xe0] sm:$0xff] }
  0x12   :  { %89 = vmatpush.msra.mxu1 %v44_v19  ;;  %142 = vmatpush.msra.mxu2 %v116_v27  ;;  %v55_v51 = vld [vmem:[%s779_s1 + $0xd0] sm:$0xff]  ;;  %v53_v52 = vld [vmem:[%s779_s1 + $0xc0] sm:$0xff]  ;;  %v191_v53 = vld [vmem:[%s782_s3 + $0x78] sm:$0xff] }
  0x13   :  { %161 = vmatpush.msra.mxu3 %v119_v26  ;;  %61 = vmatpush.msra.mxu0 %v59_v49  ;;  %v190_v54 = vld [vmem:[%s782_s3 + $0x70] sm:$0xff]  ;;  %v189_v56 = vld [vmem:[%s782_s3 + $0x68] sm:$0xff]  ;;  %v49_v57 = vld [vmem:[%s779_s1 + $0xa0] sm:$0xff] }
  0x14   :  { %90 = vmatpush.msra.mxu1 %v42_v22  ;;  %143 = vmatpush.msra.mxu2 %v114_v30  ;;  %v51_v55 = vld [vmem:[%s779_s1 + $0xb0] sm:$0xff]  ;;  %v188_v58 = vld [vmem:[%s782_s3 + $0x60] sm:$0xff]  ;;  %v187_v60 = vld [vmem:[%s782_s3 + $0x58] sm:$0xff] }
  0x15   :  { %162 = vmatpush.msra.mxu3 %v117_v29  ;;  %62 = vmatpush.msra.mxu0 %v57_v50  ;;  %v47_v59 = vld [vmem:[%s779_s1 + $0x90] sm:$0xff]  ;;  %v45_v61 = vld [vmem:[%s779_s1 + $0x80] sm:$0xff]  ;;  %v185_v0 = vld [vmem:[%s782_s3 + $0x48] sm:$0xff] }
  0x16   :  { %91 = vmatpush.msra.mxu1 %v40_v25  ;;  %144 = vmatpush.msra.mxu2 %v112_v33  ;;  %v186_v62 = vld [vmem:[%s782_s3 + $0x50] sm:$0xff]  ;;  %v41_v1 = vld [vmem:[%s779_s1 + $0x60] sm:$0xff]  ;;  %v183_v4 = vld [vmem:[%s782_s3 + $0x38] sm:$0xff] }
  0x17   :  { %163 = vmatpush.msra.mxu3 %v115_v32  ;;  %63 = vmatpush.msra.mxu0 %v55_v51  ;;  %v43_v63 = vld [vmem:[%s779_s1 + $0x70] sm:$0xff]  ;;  %v184_v2 = vld [vmem:[%s782_s3 + $0x40] sm:$0xff]  ;;  %v181_v8 = vld [vmem:[%s782_s3 + $0x28] sm:$0xff] }
  0x18   :  { %92 = vmatpush.msra.mxu1 %v38_v28  ;;  %145 = vmatpush.msra.mxu2 %v110_v36  ;;  %v39_v3 = vld [vmem:[%s779_s1 + $0x50] sm:$0xff]  ;;  %v37_v5 = vld [vmem:[%s779_s1 + $0x40] sm:$0xff]  ;;  %v179_v12 = vld [vmem:[%s782_s3 + $0x18] sm:$0xff] }
  0x19   :  { %164 = vmatpush.msra.mxu3 %v113_v35  ;;  %64 = vmatpush.msra.mxu0 %v53_v52  ;;  %v182_v6 = vld [vmem:[%s782_s3 + $0x30] sm:$0xff]  ;;  %v33_v9 = vld [vmem:[%s779_s1 + $0x20] sm:$0xff]  ;;  %v207_v15 = vld [vmem:[%s783_s4 + $0x78] sm:$0xff] }
  0x1a   :  { %93 = vmatpush.msra.mxu1 %v36_v31  ;;  %146 = vmatpush.msra.mxu2 %v108_v39  ;;  %v35_v7 = vld [vmem:[%s779_s1 + $0x30] sm:$0xff]  ;;  %v180_v10 = vld [vmem:[%s782_s3 + $0x20] sm:$0xff]  ;;  %v177_v16 = vld [vmem:[%s782_s3 + $0x8] sm:$0xff] }
  0x1b   :  { %165 = vmatpush.msra.mxu3 %v111_v38  ;;  %65 = vmatpush.msra.mxu0 %v51_v55  ;;  %v31_v11 = vld [vmem:[%s779_s1 + $0x10] sm:$0xff]  ;;  %v29_v13 = vld [vmem:[%s779_s1] sm:$0xff]  ;;  %v205_v19 = vld [vmem:[%s783_s4 + $0x68] sm:$0xff] }
  0x1c   :  { %94 = vmatpush.msra.mxu1 %v34_v34  ;;  %147 = vmatpush.msra.mxu2 %v106_v43  ;;  %v178_v14 = vld [vmem:[%s782_s3 + $0x10] sm:$0xff]  ;;  %v204_v20 = vld [vmem:[%s783_s4 + $0x60] sm:$0xff]  ;;  %v203_v21 = vld [vmem:[%s783_s4 + $0x58] sm:$0xff] }
  0x1d   :  { %166 = vmatpush.msra.mxu3 %v109_v41  ;;  %66 = vmatpush.msra.mxu0 %v49_v57  ;;  %v206_v18 = vld [vmem:[%s783_s4 + $0x70] sm:$0xff]  ;;  %v201_v23 = vld [vmem:[%s783_s4 + $0x48] sm:$0xff]  ;;  %v200_v24 = vld [vmem:[%s783_s4 + $0x40] sm:$0xff] }
  0x1e   :  { %95 = vmatpush.msra.mxu1 %v32_v37  ;;  %148 = vmatpush.msra.mxu2 %v104_v45  ;;  %v202_v22 = vld [vmem:[%s783_s4 + $0x50] sm:$0xff]  ;;  %v199_v25 = vld [vmem:[%s783_s4 + $0x38] sm:$0xff]  ;;  %v197_v27 = vld [vmem:[%s783_s4 + $0x28] sm:$0xff] }
  0x1f   :  { %167 = vmatpush.msra.mxu3 %v107_v44  ;;  %67 = vmatpush.msra.mxu0 %v47_v59  ;;  %v198_v26 = vld [vmem:[%s783_s4 + $0x30] sm:$0xff]  ;;  %v196_v28 = vld [vmem:[%s783_s4 + $0x20] sm:$0xff]  ;;  %v195_v29 = vld [vmem:[%s783_s4 + $0x18] sm:$0xff] }
  0x20   :  { %96 = vmatpush.msra.mxu1 %v30_v40  ;;  %149 = vmatpush.msra.mxu2 %v102_v47  ;;  %v194_v30 = vld [vmem:[%s783_s4 + $0x10] sm:$0xff]  ;;  %v193_v31 = vld [vmem:[%s783_s4 + $0x8] sm:$0xff]  ;;  %v176_v32 = vld [vmem:[%s782_s3] sm:$0xff] }
  0x21   :  { %97 = vmatmul.f32.vlgmr.msra.gmra.mxu1 %v505_v42  ;;  %168 = vmatpush.msra.mxu3 %v105_v46  ;;  %v192_v33 = vld [vmem:[%s783_s4] sm:$0xff]  ;;  %v280_v34 = vld [vmem:[%s784_s6 + $0x78] sm:$0xff]  ;;  %v279_v35 = vld [vmem:[%s784_s6 + $0x70] sm:$0xff] }
  0x22   :  { %229 = vmatpush.msrb.mxu1 %v191_v53  ;;  %68 = vmatpush.msra.mxu0 %v45_v61  ;;  %v264_v36 = vld [vmem:[%s785_s5 + $0x78] sm:$0xff]  ;;  %v263_v37 = vld [vmem:[%s785_s5 + $0x70] sm:$0xff]  ;;  %v278_v38 = vld [vmem:[%s784_s6 + $0x68] sm:$0xff] }
  0x23   :  { %169 = vmatpush.msra.mxu3 %v103_v48  ;;  %282 = vmatpush.msrb.mxu2 %v280_v34  ;;  %v262_v39 = vld [vmem:[%s785_s5 + $0x68] sm:$0xff]  ;;  %v277_v40 = vld [vmem:[%s784_s6 + $0x60] sm:$0xff]  ;;  %v260_v43 = vld [vmem:[%s785_s5 + $0x58] sm:$0xff] }
  0x24   :  { %230 = vmatpush.msrb.mxu1 %v190_v54  ;;  %69 = vmatpush.msra.mxu0 %v43_v63  ;;  %v261_v41 = vld [vmem:[%s785_s5 + $0x60] sm:$0xff]  ;;  %v275_v44 = vld [vmem:[%s784_s6 + $0x50] sm:$0xff]  ;;  %v274_v46 = vld [vmem:[%s784_s6 + $0x48] sm:$0xff] }
  0x25   :  { %302 = vmatpush.msrb.mxu3 %v264_v36  ;;  %283 = vmatpush.msrb.mxu2 %v279_v35  ;;  %v259_v45 = vld [vmem:[%s785_s5 + $0x50] sm:$0xff]  ;;  %v258_v47 = vld [vmem:[%s785_s5 + $0x48] sm:$0xff]  ;;  %v273_v48 = vld [vmem:[%s784_s6 + $0x40] sm:$0xff] }
  0x26   :  { %231 = vmatpush.msrb.mxu1 %v189_v56  ;;  %70 = vmatpush.msra.mxu0 %v41_v1  ;;  %v257_v49 = vld [vmem:[%s785_s5 + $0x40] sm:$0xff]  ;;  %v272_v50 = vld [vmem:[%s784_s6 + $0x38] sm:$0xff]  ;;  %v271_v52 = vld [vmem:[%s784_s6 + $0x30] sm:$0xff] }
  0x27   :  { %303 = vmatpush.msrb.mxu3 %v263_v37  ;;  %284 = vmatpush.msrb.mxu2 %v278_v38  ;;  %v256_v51 = vld [vmem:[%s785_s5 + $0x38] sm:$0xff]  ;;  %v255_v53 = vld [vmem:[%s785_s5 + $0x30] sm:$0xff]  ;;  %v270_v54 = vld [vmem:[%s784_s6 + $0x28] sm:$0xff] }
  0x28   :  { %232 = vmatpush.msrb.mxu1 %v188_v58  ;;  %71 = vmatpush.msra.mxu0 %v39_v3  ;;  %v269_v58 = vld [vmem:[%s784_s6 + $0x20] sm:$0xff]  ;;  %v268_v59 = vld [vmem:[%s784_s6 + $0x18] sm:$0xff]  ;;  %v266_v61 = vld [vmem:[%s784_s6 + $0x8] sm:$0xff] }
  0x29   :  { %304 = vmatpush.msrb.mxu3 %v262_v39  ;;  %285 = vmatpush.msrb.mxu2 %v277_v40  ;;  %v265_v63 = vld [vmem:[%s784_s6] sm:$0xff]  ;;  %v252_v1 = vld [vmem:[%s785_s5 + $0x18] sm:$0xff]  ;;  %v250_v3 = vld [vmem:[%s785_s5 + $0x8] sm:$0xff] }
  0x2a   :  { %233 = vmatpush.msrb.mxu1 %v187_v60  ;;  %72 = vmatpush.msra.mxu0 %v37_v5  ;;  %v267_v60 = vld [vmem:[%s784_s6 + $0x10] sm:$0xff] }
  0x2b   :  { %305 = vmatpush.msrb.mxu3 %v261_v41 }
  0x2c   :  { %234 = vmatpush.msrb.mxu1 %v186_v62  ;;  %73 = vmatpush.msra.mxu0 %v35_v7  ;;  %v254_v62 = vld [vmem:[%s785_s5 + $0x28] sm:$0xff] }
  0x2d   :  { %306 = vmatpush.msrb.mxu3 %v260_v43 }
  0x2e   :  { %235 = vmatpush.msrb.mxu1 %v185_v0  ;;  %74 = vmatpush.msra.mxu0 %v33_v9  ;;  %v253_v0 = vld [vmem:[%s785_s5 + $0x20] sm:$0xff] }
  0x2f   :  { %307 = vmatpush.msrb.mxu3 %v259_v45 }
  0x30   :  { %236 = vmatpush.msrb.mxu1 %v184_v2  ;;  %75 = vmatpush.msra.mxu0 %v31_v11  ;;  %v251_v2 = vld [vmem:[%s785_s5 + $0x10] sm:$0xff] }
  0x31   :  { %308 = vmatpush.msrb.mxu3 %v258_v47 }
  0x32   :  { %237 = vmatpush.msrb.mxu1 %v183_v4  ;;  %76 = vmatpush.msra.mxu0 %v29_v13  ;;  %v249_v4 = vld [vmem:[%s785_s5] sm:$0xff] }
  0x33   :  { %77 = vmatmul.f32.vlgmr.msra.gmra.mxu0 %v505_v42  ;;  %v276_v42 = vld [vmem:[%s784_s6 + $0x58] sm:$0xff]  ;;  %309 = vmatpush.msrb.mxu3 %v257_v49 }
  0x34   :  { %238 = vmatpush.msrb.mxu1 %v182_v6  ;;  %209 = vmatpush.msrb.mxu0 %v207_v15 }
  0x35   :  { %286 = vmatpush.msrb.mxu2 %v276_v42  ;;  %310 = vmatpush.msrb.mxu3 %v256_v51 }
  0x36   :  { %239 = vmatpush.msrb.mxu1 %v181_v8  ;;  %210 = vmatpush.msrb.mxu0 %v206_v18 }
  0x37   :  { %287 = vmatpush.msrb.mxu2 %v275_v44  ;;  %311 = vmatpush.msrb.mxu3 %v255_v53 }
  0x38   :  { %240 = vmatpush.msrb.mxu1 %v180_v10  ;;  %211 = vmatpush.msrb.mxu0 %v205_v19 }
  0x39   :  { %288 = vmatpush.msrb.mxu2 %v274_v46  ;;  %312 = vmatpush.msrb.mxu3 %v254_v62 }
  0x3a   :  { %241 = vmatpush.msrb.mxu1 %v179_v12  ;;  %212 = vmatpush.msrb.mxu0 %v204_v20 }
  0x3b   :  { %289 = vmatpush.msrb.mxu2 %v273_v48  ;;  %313 = vmatpush.msrb.mxu3 %v253_v0 }
  0x3c   :  { %242 = vmatpush.msrb.mxu1 %v178_v14  ;;  %213 = vmatpush.msrb.mxu0 %v203_v21 }
  0x3d   :  { %290 = vmatpush.msrb.mxu2 %v272_v50  ;;  %314 = vmatpush.msrb.mxu3 %v252_v1 }
  0x3e   :  { %243 = vmatpush.msrb.mxu1 %v177_v16  ;;  %214 = vmatpush.msrb.mxu0 %v202_v22 }
  0x3f   :  { %291 = vmatpush.msrb.mxu2 %v271_v52  ;;  %315 = vmatpush.msrb.mxu3 %v251_v2 }
  0x40   :  { %215 = vmatpush.msrb.mxu0 %v201_v23  ;;  %244 = vmatpush.msrb.mxu1 %v176_v32 }
  0x41   :  { %292 = vmatpush.msrb.mxu2 %v270_v54  ;;  %316 = vmatpush.msrb.mxu3 %v250_v3 }
  0x42   :  { %216 = vmatpush.msrb.mxu0 %v200_v24 }
  0x43   :  { %293 = vmatpush.msrb.mxu2 %v269_v58  ;;  %317 = vmatpush.msrb.mxu3 %v249_v4 }
  0x44   :  { %217 = vmatpush.msrb.mxu0 %v199_v25 }
  0x45   :  { %294 = vmatpush.msrb.mxu2 %v268_v59 }
  0x46   :  { %218 = vmatpush.msrb.mxu0 %v198_v26 }
  0x47   :  { %295 = vmatpush.msrb.mxu2 %v267_v60 }
  0x48   :  { %219 = vmatpush.msrb.mxu0 %v197_v27 }
  0x49   :  { %296 = vmatpush.msrb.mxu2 %v266_v61 }
  0x4a   :  { %220 = vmatpush.msrb.mxu0 %v196_v28 }
  0x4b   :  { %297 = vmatpush.msrb.mxu2 %v265_v63 }
  0x4c   :  { %221 = vmatpush.msrb.mxu0 %v195_v29 }
  0x4e   :  { %222 = vmatpush.msrb.mxu0 %v194_v30 }
  0x50   :  { %223 = vmatpush.msrb.mxu0 %v193_v31 }
  0x52   :  { %224 = vmatpush.msrb.mxu0 %v192_v33 }
  0x9e   :  { %v98_v17 = vpop.f32.mrf.mxu1 }
  0x9f   :  { %150 = vmatmul.f32.vlgmr.msra.gmra.mxu2 %v98_v17  ;;  %170 = vmatmul.f32.vlgmr.msra.gmra.mxu3 %v98_v17 }
  0xb0   :  { %v78_v55 = vpop.f32.mrf.mxu0 }
  0xb1   :  { %101 = vst [vmem:[%s786_s7] sm:$0xff] %v78_v55  ;;  %298 = vmatmul.f32.vlgmr.msrb.gmra.mxu2 %v78_v55 }
 0x122   :  { %v151_v56 = vpop.f32.mrf.mxu2  ;;  %v171_v57 = vpop.f32.mrf.mxu3 }
 0x123   :  { %174 = vst [vmem:[%s786_s7 + $0x8] sm:$0xff] %v151_v56  ;;  %245 = vmatmul.f32.vlgmr.msrb.gmra.mxu1 %v171_v57  ;;  %225 = vmatmul.f32.vlgmr.msrb.gmra.mxu0 %v151_v56 }
 0x124   :  { %175 = vst [vmem:[%s786_s7 + $0x10] sm:$0xff] %v171_v57 }
 0x134   :  { %v299_v8 = vpop.f32.mrf.mxu2 }
 0x1a0   :  { %v246_v5 = vpop.f32.mrf.mxu1  ;;  %v226_v6 = vpop.f32.mrf.mxu0 }
 0x1a1   :  { %v247_v7 = vadd.f32 %v246_v5, %v226_v6 }
 0x1a3   :  { %318 = vmatmul.f32.vlgmr.msrb.gmra.mxu3 %v247_v7 }
 0x226   :  { %v319_v9 = vpop.f32.mrf.mxu3 }
 0x227   :  { %v320_v10 = vadd.f32 %v319_v9, %v299_v8 }
 0x229   :  { %322 = vst [vmem:[%s787_s8] sm:$0xff] %v320_v10 }

</bundles_post_ra>
